<compile_context>
chip_gen: v7x
topology: tpu7x:2x2x1
jax: 0.10.0
libtpu: 0.0.40
codegen_flags: <defaults>
</compile_context>

<pallas_src>
import jax
import jax.numpy as jnp
from jax.experimental import pallas as pl
from jax.experimental.pallas import tpu as pltpu


# ---------------------------------------------------------------------------
# Pallas kernel: out = x_k + pred_k * (1 - mask)   (both channels per block)
# ---------------------------------------------------------------------------
def _dc_merge_kernel(xk_ref, pk_ref, m_ref, out_ref):
    # xk_ref / pk_ref / out_ref: (1, 2, r_tile, lanes) f32
    # m_ref: (r_tile, lanes) [shared mask] or (1, r_tile, lanes) [per-batch]
    keep = 1.0 - m_ref[...]
    while keep.ndim < 4:          # normalize to (1, 1, r_tile, lanes)
        keep = keep[None]
    out_ref[...] = xk_ref[...] + pk_ref[...] * keep


# ---------------------------------------------------------------------------
# Tiling helpers
# ---------------------------------------------------------------------------
_JNP_FALLBACK_BYTES = 64 * 1024   # below this, plain fused jnp beats a launch
_FALLBACK_LANES = 512             # lane width for the (rare) repack fallback
_MERGE_PARAMS_CACHE = None


def _merge_params():
    """(target per-stream block bytes, vmem_limit_bytes) per TPU generation."""
    global _MERGE_PARAMS_CACHE
    if _MERGE_PARAMS_CACHE is not None:
        return _MERGE_PARAMS_CACHE
    target_block, vmem_limit = 1 << 20, 40 << 20      # safe on v7x (64 MiB VMEM)
    try:
        cap = int(pltpu.get_tpu_info().vmem_capacity_bytes)
        if cap > (96 << 20):                          # v5e / v6e (128 MiB VMEM)
            target_block, vmem_limit = 2 << 20, 64 << 20
    except Exception:
        pass
    _MERGE_PARAMS_CACHE = (target_block, vmem_limit)
    return _MERGE_PARAMS_CACHE


def _legal_row_tiles(rows):
    """Row-block sizes satisfying the (8,128) rule: multiples of 8 dividing
    `rows`, plus `rows` itself (full-dim blocks are always legal)."""
    tiles = {rows}
    for r in range(8, rows, 8):
        if rows % r == 0:
            tiles.add(r)
    return sorted(tiles)


def _pick_row_tile(rows, target_rows):
    tiles = _legal_row_tiles(rows)
    fitting = [r for r in tiles if r <= target_rows]
    return fitting[-1] if fitting else tiles[0]


# ---------------------------------------------------------------------------
# dc_merge: out_k = x_k + pred * (1 - mask), planar f32 layout
# ---------------------------------------------------------------------------
def dc_merge(x_k, pred, mask, *, per_batch_mask):
    """x_k, pred: (n, 2, h, w) f32; mask: (h, w) shared or (n, h, w) per-batch."""
    x_k = x_k.astype(jnp.float32)
    pred = pred.astype(jnp.float32)
    mask = mask.astype(jnp.float32)

    n, two, h, w = x_k.shape
    assert two == 2
    if per_batch_mask:
        assert mask.shape == (n, h, w)
    else:
        assert mask.shape == (h, w)

    # Tiny inputs: launch + layout plumbing would dominate; let XLA fuse it.
    if x_k.size * x_k.dtype.itemsize < _JNP_FALLBACK_BYTES:
        keep = 1.0 - mask
        keep = keep[:, None] if per_batch_mask else keep[None, None]
        return x_k + pred * keep

    # Layout: natural (n, 2, h, w) when w is lane-dense; otherwise repack the
    # flattened spatial axis into (rows, 512) with minimal zero padding.
    if w % 128 == 0:
        rows, lanes = h, w
        xk2, pk2, m2 = x_k, pred, mask
        repacked = False
    else:
        lanes = _FALLBACK_LANES
        L = h * w
        rows = pl.cdiv(pl.cdiv(L, lanes), 8) * 8
        pad = rows * lanes - L

        def repack(a):
            lead = a.shape[:-2]
            flat = a.reshape(*lead, L)
            flat = jnp.pad(flat, [(0, 0)] * len(lead) + [(0, pad)])
            return flat.reshape(*lead, rows, lanes)

        xk2, pk2, m2 = repack(x_k), repack(pred), repack(mask)
        repacked = True

    target_block_bytes, vmem_limit = _merge_params()
    target_rows = max(8, target_block_bytes // (8 * lanes))   # block = 2*r*lanes f32
    r_tile = _pick_row_tile(rows, target_rows)
    n_chunks = rows // r_tile
    if n * n_chunks < 2:                  # keep both v7x TensorCores busy
        smaller = [r for r in _legal_row_tiles(rows) if r < rows]
        if smaller:
            r_tile = smaller[-1]
            n_chunks = rows // r_tile

    data_spec = pl.BlockSpec((1, 2, r_tile, lanes), lambda b, i: (b, 0, i, 0))
    if per_batch_mask:
        mask_spec = pl.BlockSpec((1, r_tile, lanes), lambda b, i: (b, i, 0))
    else:
        # Shared mask: index_map ignores the batch grid index, so the same
        # block is re-fetched (never broadcast/materialized to (n, h, w)).
        mask_spec = pl.BlockSpec((r_tile, lanes), lambda b, i: (i, 0))

    out = pl.pallas_call(
        _dc_merge_kernel,
        out_shape=jax.ShapeDtypeStruct(xk2.shape, jnp.float32),
        grid=(n, n_chunks),
        in_specs=[data_spec, data_spec, mask_spec],
        out_specs=data_spec,
        compiler_params=pltpu.CompilerParams(
            dimension_semantics=("parallel", "parallel"),
            vmem_limit_bytes=vmem_limit,
        ),
        cost_estimate=pl.CostEstimate(
            flops=3 * xk2.size,
            transcendentals=0,
            bytes_accessed=4 * (3 * xk2.size + m2.size),
        ),
    )(xk2, pk2, m2)

    if not repacked:
        return out
    return out.reshape(n, 2, rows * lanes)[..., : h * w].reshape(n, 2, h, w)


# ---------------------------------------------------------------------------
# DataConsistency_M forward
# ---------------------------------------------------------------------------
def data_consistency_forward(x, x_k, mask):
    """x, x_k: (n, 2, h, w); mask: (h, w), (1, h, w), (n, h, w) or (n, 1, h, w).

    Returns (n, 2, h, w): ifft2(x_k_complex + fft2(x_complex) * (1 - mask))
    split into real / imag channels — identical math to the PyTorch reference
    (which does NOT mask x_k; x_k is assumed zero outside the sampling mask).
    """
    x = jnp.asarray(x, jnp.float32)
    x_k = jnp.asarray(x_k, jnp.float32)
    mask = jnp.asarray(mask, jnp.float32)
    n, c, h, w = x.shape
    assert c == 2

    # Normalize mask: (h, w) shared across the batch, or (n, h, w) per-batch.
    if mask.ndim == 4:
        mask = mask[:, 0]
    if mask.ndim == 3 and mask.shape[0] == 1:
        mask = mask[0]
    per_batch_mask = mask.ndim == 3
    if per_batch_mask:
        assert mask.shape[0] == n

    gene_img = jax.lax.complex(x[:, 0], x[:, 1])
    # TODO(synk): fft_my / ifft_my are assumed to be plain (unshifted,
    # non-ortho) fft2 / ifft2 over the last two axes; FFT has no Pallas
    # primitive so it stays in jnp.fft.
    pred_k = jnp.fft.fft2(gene_img, axes=(-2, -1))
    # Single fused deinterleave pass (complex64 cannot be bitcast in JAX).
    pred_planar = jnp.stack([jnp.real(pred_k), jnp.imag(pred_k)], axis=1)

    out_k = dc_merge(x_k, pred_planar, mask, per_batch_mask=per_batch_mask)

    out_c = jnp.fft.ifft2(jax.lax.complex(out_k[:, 0], out_k[:, 1]), axes=(-2, -1))
    return jnp.stack([jnp.real(out_c), jnp.imag(out_c)], axis=1)


# ---------------------------------------------------------------------------
if __name__ == "__main__":
    key = jax.random.PRNGKey(0)
    kx, kk, km, km2 = jax.random.split(key, 4)

    def reference(x, x_k, mask):
        m = mask if mask.ndim == 3 else mask[None]
        m = jnp.broadcast_to(m, (x.shape[0],) + x.shape[2:])
        pred_k = jnp.fft.fft2(x[:, 0] + 1j * x[:, 1], axes=(-2, -1))
        merged = (x_k[:, 0] + 1j * x_k[:, 1]) + pred_k * (1.0 - m)
        out_c = jnp.fft.ifft2(merged, axes=(-2, -1))
        return jnp.stack([jnp.real(out_c), jnp.imag(out_c)], axis=1)

    fwd = jax.jit(data_consistency_forward)

    # 1) Pallas path, natural lane-dense layout, shared mask (index_map reuse).
    n, h, w = 2, 128, 128
    x = jax.random.normal(kx, (n, 2, h, w), jnp.float32)
    x_k = jax.random.normal(kk, (n, 2, h, w), jnp.float32)
    mask = (jax.random.uniform(km, (1, h, w)) > 0.5).astype(jnp.float32)
    out = fwd(x, x_k, mask)
    jax.block_until_ready(out)
    ref = reference(x, x_k, mask[0])
    assert out.shape == (n, 2, h, w), out.shape
    assert bool(jnp.all(jnp.isfinite(out)))
    assert jnp.allclose(out, ref, atol=1e-3, rtol=1e-3), float(
        jnp.max(jnp.abs(out - ref)))

    # 2) Pallas path, per-batch mask.
    mask_b = (jax.random.uniform(km2, (n, h, w)) > 0.5).astype(jnp.float32)
    out_b = fwd(x, x_k, mask_b)
    jax.block_until_ready(out_b)
    ref_b = reference(x, x_k, mask_b)
    assert jnp.allclose(out_b, ref_b, atol=1e-3, rtol=1e-3), float(
        jnp.max(jnp.abs(out_b - ref_b)))

    # 3) Pallas path, w not a multiple of 128 -> padded (rows, 512) fallback.
    h3, w3 = 96, 96
    x3 = jax.random.normal(kx, (n, 2, h3, w3), jnp.float32)
    xk3 = jax.random.normal(kk, (n, 2, h3, w3), jnp.float32)
    m3 = (jax.random.uniform(km, (n, h3, w3)) > 0.5).astype(jnp.float32)
    out3 = fwd(x3, xk3, m3)
    jax.block_until_ready(out3)
    ref3 = reference(x3, xk3, m3)
    assert jnp.allclose(out3, ref3, atol=1e-3, rtol=1e-3), float(
        jnp.max(jnp.abs(out3 - ref3)))

    # 4) Tiny shape -> fused-jnp fallback (Pallas launch overhead not worth it).
    hs, ws = 16, 16
    xs = jax.random.normal(kx, (n, 2, hs, ws), jnp.float32)
    xks = jax.random.normal(kk, (n, 2, hs, ws), jnp.float32)
    ms = (jax.random.uniform(km2, (n, hs, ws)) > 0.5).astype(jnp.float32)
    outs = fwd(xs, xks, ms)
    jax.block_until_ready(outs)
    refs = reference(xs, xks, ms)
    assert jnp.allclose(outs, refs, atol=1e-3, rtol=1e-3), float(
        jnp.max(jnp.abs(outs - refs)))

    print("KERNEL_OK")
</pallas_src>

<mosaic_0001>
module attributes {stable_mosaic.version = 11 : i64} {
  func.func @_dc_merge_kernel(%arg0: i32, %arg1: i32, %arg2: memref<1x2x128x128xf32, #tpu.memory_space<vmem>>, %arg3: memref<1x2x128x128xf32, #tpu.memory_space<vmem>>, %arg4: memref<128x128xf32, #tpu.memory_space<vmem>>, %arg5: memref<1x2x128x128xf32, #tpu.memory_space<vmem>>) attributes {dimension_semantics = [#tpu.dimension_semantics<parallel>, #tpu.dimension_semantics<parallel>], iteration_bounds = array<i64: 2, 1>, scalar_prefetch = 0 : i64, scratch_operands = 0 : i64, tpu.core_type = #tpu.core_type<tc>, window_params = [{transform_indices = @transform_0, window_bounds = array<i64: 1, 2, 128, 128>}, {transform_indices = @transform_1, window_bounds = array<i64: 1, 2, 128, 128>}, {transform_indices = @transform_2, window_bounds = array<i64: 128, 128>}, {transform_indices = @transform_3, window_bounds = array<i64: 1, 2, 128, 128>}]} {
    %c0 = arith.constant 0 : index
    %c0_0 = arith.constant 0 : index
    %0 = vector.load %arg4[%c0, %c0_0] : memref<128x128xf32, #tpu.memory_space<vmem>>, vector<128x128xf32>
    %cst = arith.constant 1.000000e+00 : f32
    %1 = vector.broadcast %cst : f32 to vector<128x128xf32>
    %2 = arith.subf %1, %0 : vector<128x128xf32>
    %3 = vector.shape_cast %2 : vector<128x128xf32> to vector<1x128x128xf32>
    %4 = vector.shape_cast %3 : vector<1x128x128xf32> to vector<1x1x128x128xf32>
    %c0_1 = arith.constant 0 : index
    %c0_2 = arith.constant 0 : index
    %c0_3 = arith.constant 0 : index
    %c0_4 = arith.constant 0 : index
    %5 = vector.load %arg2[%c0_1, %c0_2, %c0_3, %c0_4] : memref<1x2x128x128xf32, #tpu.memory_space<vmem>>, vector<1x2x128x128xf32>
    %c0_5 = arith.constant 0 : index
    %c0_6 = arith.constant 0 : index
    %c0_7 = arith.constant 0 : index
    %c0_8 = arith.constant 0 : index
    %6 = vector.load %arg3[%c0_5, %c0_6, %c0_7, %c0_8] : memref<1x2x128x128xf32, #tpu.memory_space<vmem>>, vector<1x2x128x128xf32>
    %7 = vector.broadcast %4 : vector<1x1x128x128xf32> to vector<1x2x128x128xf32>
    %8 = arith.mulf %6, %7 : vector<1x2x128x128xf32>
    %9 = arith.addf %5, %8 : vector<1x2x128x128xf32>
    %c0_9 = arith.constant 0 : index
    %c0_10 = arith.constant 0 : index
    %c0_11 = arith.constant 0 : index
    %c0_12 = arith.constant 0 : index
    %10 = vector.load %arg5[%c0_9, %c0_10, %c0_11, %c0_12] : memref<1x2x128x128xf32, #tpu.memory_space<vmem>>, vector<1x2x128x128xf32>
    tpu.vector_store %arg5[%c0_9, %c0_10, %c0_11, %c0_12], %9 {strides = array<i32>} : memref<1x2x128x128xf32, #tpu.memory_space<vmem>>, vector<1x2x128x128xf32>,
    return
  }
  func.func @transform_0(%arg0: i32, %arg1: i32) -> (i32, i32, i32, i32) {
    %c0_i32 = arith.constant 0 : i32
    %c0_i32_0 = arith.constant 0 : i32
    %c0_i32_1 = arith.constant 0 : i32
    return %arg0, %c0_i32, %arg1, %c0_i32_0 : i32, i32, i32, i32
  }
  func.func @transform_1(%arg0: i32, %arg1: i32) -> (i32, i32, i32, i32) {
    %c0_i32 = arith.constant 0 : i32
    %c0_i32_0 = arith.constant 0 : i32
    %c0_i32_1 = arith.constant 0 : i32
    return %arg0, %c0_i32, %arg1, %c0_i32_0 : i32, i32, i32, i32
  }
  func.func @transform_2(%arg0: i32, %arg1: i32) -> (i32, i32) {
    %c0_i32 = arith.constant 0 : i32
    %c0_i32_0 = arith.constant 0 : i32
    return %arg1, %c0_i32 : i32, i32
  }
  func.func @transform_3(%arg0: i32, %arg1: i32) -> (i32, i32, i32, i32) {
    %c0_i32 = arith.constant 0 : i32
    %c0_i32_0 = arith.constant 0 : i32
    %c0_i32_1 = arith.constant 0 : i32
    return %arg0, %c0_i32, %arg1, %c0_i32_0 : i32, i32, i32, i32
  }
}

</mosaic_0001>

<bundles_post_ra>
// kernel: data_consistency_forward.1
= control target key start
LH: loop header
LB: loop body
LE: loop exit
PB: predicated region body
PF: predicated region fallthrough
CT: control target
= control target key end

     0   :  { %s665_s12 = smov 0   ;;  %s667_s13 = smov 0   ;;  %s963_s0 = inlined_call_operand.vmem [shape: f32[2,2,128,128], index: 0, kind: input, shape index: {}]   ;;  %s964_s1 = inlined_call_operand.vmem [shape: f32[2,2,128,128], index: 1, kind: input, shape index: {}]   ;;  %s965_s2 = inlined_call_operand.vmem [shape: f32[128,128], index: 2, kind: input, shape index: {}]   ;;  %s966_s3 = inlined_call_operand.vmem [shape: f32[2,2,128,128], index: 3, kind: output, shape index: {}]  }
   0x1   :  { %s669_s14 = smov 0  }
   0x2 LB: > { %s25_s15 = sadd.s32 1, %s639_s13  ;;  %p585_p0 = scmp.ge.s32.totalorder %s643_s14, 1  ;;  %s643_s14 = sphi %s669_s14, %s13_s14   ;;  %s639_s13 = sphi %s667_s13, %s968_s13   ;;  %s635_s12 = sphi %s665_s12, %s967_s12  }
   0x3   : > { %p27_p1 = scmp.ge.s32.totalorder %s25_s15, 2  ;;  %p186_p2 = scmp.lt.s32.totalorder %s643_s14, 3 }
   0x5   : > { %s970_s15 = smov (%p27_p1, %s25_s15), 0  ;;  %p187_p3 = pnand %p585_p0, %p186_p2 }
   0x6   : > { %p233_p4 = scmp.lt.s32.totalorder (!%p187_p3), %s635_s12, 1  ;;  %v686_v0 = vld [vmem:[%s965_s2] sm:$0xff] (!%p187_p3)  ;;  %v691_v1 = vld [vmem:[%s965_s2 + $0x8] sm:$0xff] (!%p187_p3)  ;;  %v696_v2 = vld [vmem:[%s965_s2 + $0x10] sm:$0xff] (!%p187_p3) }
   0x7   : > { %190 = sbr.rel (%p187_p3) target bundleno = 46 (0x2e), region = 32  ;;  %v701_v3 = vld [vmem:[%s965_s2 + $0x18] sm:$0xff] (!%p187_p3)  ;;  %v284_v4 = vsub.f32 (!%p187_p3), 1.0, %v686_v0  ;;  %v707_v5 = vld [vmem:[%s965_s2 + $0x20] sm:$0xff] (!%p187_p3)  ;;  %v712_v6 = vld [vmem:[%s965_s2 + $0x28] sm:$0xff] (!%p187_p3)  ;;  %v285_v8 = vsub.f32 (!%p187_p3), 1.0, %v691_v1 }
   0x8   : > { %v717_v7 = vld [vmem:[%s965_s2 + $0x30] sm:$0xff] (!%p187_p3)  ;;  %v286_v9 = vsub.f32 (!%p187_p3), 1.0, %v696_v2  ;;  %v724_v10 = vld [vmem:[%s965_s2 + $0x38] sm:$0xff] (!%p187_p3)  ;;  %v729_v11 = vld [vmem:[%s965_s2 + $0x40] sm:$0xff] (!%p187_p3)  ;;  %v287_v13 = vsub.f32 (!%p187_p3), 1.0, %v701_v3  ;;  %v288_v20 = vsub.f32 (!%p187_p3), 1.0, %v707_v5 }
   0x9   : > { %v734_v12 = vld [vmem:[%s965_s2 + $0x48] sm:$0xff] (!%p187_p3)  ;;  %v750_v14 = vld [vmem:[%s965_s2 + $0x50] sm:$0xff] (!%p187_p3)  ;;  %v755_v15 = vld [vmem:[%s965_s2 + $0x58] sm:$0xff] (!%p187_p3)  ;;  %v289_v21 = vsub.f32 (!%p187_p3), 1.0, %v712_v6  ;;  %v290_v28 = vsub.f32 (!%p187_p3), 1.0, %v717_v7  ;;  %v291_v29 = vsub.f32 (!%p187_p3), 1.0, %v724_v10 }
   0xa   : > { %v760_v16 = vld [vmem:[%s965_s2 + $0x60] sm:$0xff] (!%p187_p3)  ;;  %v770_v22 = vld [vmem:[%s965_s2 + $0x68] sm:$0xff] (!%p187_p3)  ;;  %v775_v23 = vld [vmem:[%s965_s2 + $0x70] sm:$0xff] (!%p187_p3)  ;;  %v292_v30 = vsub.f32 (!%p187_p3), 1.0, %v729_v11  ;;  %v293_v36 = vsub.f32 (!%p187_p3), 1.0, %v734_v12  ;;  %v294_v37 = vsub.f32 (!%p187_p3), 1.0, %v750_v14 }
   0xb   : > { %v802_v38 = vld [vmem:[%s965_s2 + $0x78] sm:$0xff] (!%p187_p3)  ;;  %v295_v44 = vsub.f32 (!%p187_p3), 1.0, %v755_v15  ;;  %v296_v45 = vsub.f32 (!%p187_p3), 1.0, %v760_v16  ;;  %v297_v58 = vsub.f32 (!%p187_p3), 1.0, %v770_v22  ;;  %v298_v59 = vsub.f32 (!%p187_p3), 1.0, %v775_v23 }
   0xe   : > { %s972_s12 = smov (!%p233_p4, %s635_s12), 1 }
   0xf   : > { %s594_s30 = sshll.u32 %s972_s12, 8 }
  0x10   : > { %s739_s12 = scalar_lea.vmem %s963_s0, %s594_s30  ;;  %s744_s18 = scalar_lea.vmem %s964_s1, %s594_s30 }
  0x11   : > { %v300_v17 = vld [vmem:[%s739_s12] sm:$0xff]  ;;  %v301_v19 = vld [vmem:[%s739_s12 + $0x8] sm:$0xff]  ;;  %v302_v26 = vld [vmem:[%s739_s12 + $0x10] sm:$0xff]  ;;  %s788_s5 = scalar_lea.vmem %s966_s3, %s594_s30 }
  0x12   : > { %v332_v18 = vld [vmem:[%s744_s18] sm:$0xff]  ;;  %v333_v25 = vld [vmem:[%s744_s18 + $0x8] sm:$0xff]  ;;  %v334_v27 = vld [vmem:[%s744_s18 + $0x10] sm:$0xff] }
  0x13   : > { %v364_v24 = vmul.f32 %v332_v18, %v284_v4  ;;  %v365_v31 = vmul.f32 %v333_v25, %v285_v8  ;;  %v366_v32 = vmul.f32 %v334_v27, %v286_v9  ;;  %v303_v33 = vld [vmem:[%s739_s12 + $0x18] sm:$0xff]  ;;  %v304_v35 = vld [vmem:[%s739_s12 + $0x20] sm:$0xff]  ;;  %v305_v42 = vld [vmem:[%s739_s12 + $0x28] sm:$0xff] }
  0x14   : > { %v335_v34 = vld [vmem:[%s744_s18 + $0x18] sm:$0xff]  ;;  %v336_v41 = vld [vmem:[%s744_s18 + $0x20] sm:$0xff]  ;;  %v337_v43 = vld [vmem:[%s744_s18 + $0x28] sm:$0xff] }
  0x15   : > { %v396_v39 = vadd.f32 %v364_v24, %v300_v17  ;;  %v367_v40 = vmul.f32 %v335_v34, %v287_v13  ;;  %v397_v46 = vadd.f32 %v365_v31, %v301_v19  ;;  %v398_v47 = vadd.f32 %v366_v32, %v302_v26  ;;  %v306_v50 = vld [vmem:[%s739_s12 + $0x30] sm:$0xff]  ;;  %v307_v52 = vld [vmem:[%s739_s12 + $0x38] sm:$0xff]  ;;  %v308_v56 = vld [vmem:[%s739_s12 + $0x40] sm:$0xff] }
  0x16   : > { %v368_v48 = vmul.f32 %v336_v41, %v288_v20  ;;  %v369_v49 = vmul.f32 %v337_v43, %v289_v21  ;;  %v338_v51 = vld [vmem:[%s744_s18 + $0x30] sm:$0xff]  ;;  %v339_v55 = vld [vmem:[%s744_s18 + $0x38] sm:$0xff]  ;;  %v340_v57 = vld [vmem:[%s744_s18 + $0x40] sm:$0xff]  ;;  %v299_v32 = vsub.f32 1.0, %v802_v38 }
  0x17   : > { %428 = vst [vmem:[%s788_s5] sm:$0xff] %v396_v39  ;;  %v399_v53 = vadd.f32 %v367_v40, %v303_v33  ;;  %v370_v54 = vmul.f32 %v338_v51, %v290_v28  ;;  %429 = vst [vmem:[%s788_s5 + $0x8] sm:$0xff] %v397_v46  ;;  %v371_v62 = vmul.f32 %v339_v55, %v291_v29  ;;  %v309_v17 = vld [vmem:[%s739_s12 + $0x48] sm:$0xff]  ;;  %v310_v19 = vld [vmem:[%s739_s12 + $0x50] sm:$0xff] }
  0x18   : > { %430 = vst [vmem:[%s788_s5 + $0x10] sm:$0xff] %v398_v47  ;;  %v400_v60 = vadd.f32 %v368_v48, %v304_v35  ;;  %v401_v61 = vadd.f32 %v369_v49, %v305_v42  ;;  %v372_v63 = vmul.f32 %v340_v57, %v292_v30  ;;  %v341_v18 = vld [vmem:[%s744_s18 + $0x48] sm:$0xff]  ;;  %v342_v26 = vld [vmem:[%s744_s18 + $0x50] sm:$0xff]  ;;  %v311_v27 = vld [vmem:[%s739_s12 + $0x58] sm:$0xff] }
  0x19   : > { %431 = vst [vmem:[%s788_s5 + $0x18] sm:$0xff] %v399_v53  ;;  %v402_v24 = vadd.f32 %v370_v54, %v306_v50  ;;  %v373_v25 = vmul.f32 %v341_v18, %v293_v36  ;;  %v343_v31 = vld [vmem:[%s744_s18 + $0x58] sm:$0xff]  ;;  %v403_v33 = vadd.f32 %v371_v62, %v307_v52  ;;  %v374_v35 = vmul.f32 %v342_v26, %v294_v37  ;;  %v312_v40 = vld [vmem:[%s739_s12 + $0x60] sm:$0xff]  ;;  %v313_v42 = vld [vmem:[%s739_s12 + $0x68] sm:$0xff] }
  0x1a   : > { %432 = vst [vmem:[%s788_s5 + $0x20] sm:$0xff] %v400_v60  ;;  %433 = vst [vmem:[%s788_s5 + $0x28] sm:$0xff] %v401_v61  ;;  %v404_v34 = vadd.f32 %v372_v63, %v308_v56  ;;  %v375_v39 = vmul.f32 %v343_v31, %v295_v44  ;;  %v344_v41 = vld [vmem:[%s744_s18 + $0x60] sm:$0xff]  ;;  %v345_v47 = vld [vmem:[%s744_s18 + $0x68] sm:$0xff] }
  0x1b   : > { %434 = vst [vmem:[%s788_s5 + $0x30] sm:$0xff] %v402_v24  ;;  %v405_v43 = vadd.f32 %v373_v25, %v309_v17  ;;  %v376_v46 = vmul.f32 %v344_v41, %v296_v45  ;;  %v314_v48 = vld [vmem:[%s739_s12 + $0x70] sm:$0xff]  ;;  %435 = vst [vmem:[%s788_s5 + $0x38] sm:$0xff] %v403_v33  ;;  %v406_v50 = vadd.f32 %v374_v35, %v310_v19  ;;  %v315_v54 = vld [vmem:[%s739_s12 + $0x78] sm:$0xff] }
  0x1c   : > { %v346_v49 = vld [vmem:[%s744_s18 + $0x70] sm:$0xff]  ;;  %436 = vst [vmem:[%s788_s5 + $0x40] sm:$0xff] %v404_v34  ;;  %v407_v51 = vadd.f32 %v375_v39, %v311_v27  ;;  %v377_v52 = vmul.f32 %v345_v47, %v297_v58  ;;  %v347_v55 = vld [vmem:[%s744_s18 + $0x78] sm:$0xff]  ;;  %v316_v56 = vld [vmem:[%s739_s12 + $0x80] sm:$0xff] }
  0x1d   : > { %v378_v53 = vmul.f32 %v346_v49, %v298_v59  ;;  %437 = vst [vmem:[%s788_s5 + $0x48] sm:$0xff] %v405_v43  ;;  %v408_v57 = vadd.f32 %v376_v46, %v312_v40  ;;  %v379_v60 = vmul.f32 %v347_v55, %v299_v32  ;;  %v348_v61 = vld [vmem:[%s744_s18 + $0x80] sm:$0xff]  ;;  %v317_v62 = vld [vmem:[%s739_s12 + $0x88] sm:$0xff]  ;;  %438 = vst [vmem:[%s788_s5 + $0x50] sm:$0xff] %v406_v50 }
  0x1e   : > { %v349_v63 = vld [vmem:[%s744_s18 + $0x88] sm:$0xff]  ;;  %439 = vst [vmem:[%s788_s5 + $0x58] sm:$0xff] %v407_v51  ;;  %v409_v17 = vadd.f32 %v377_v52, %v313_v42  ;;  %v380_v19 = vmul.f32 %v348_v61, %v284_v4  ;;  %v318_v25 = vld [vmem:[%s739_s12 + $0x90] sm:$0xff]  ;;  %v319_v27 = vld [vmem:[%s739_s12 + $0x98] sm:$0xff] }
  0x1f   : > { %v410_v18 = vadd.f32 %v378_v53, %v314_v48  ;;  %v381_v24 = vmul.f32 %v349_v63, %v285_v8  ;;  %v350_v26 = vld [vmem:[%s744_s18 + $0x90] sm:$0xff]  ;;  %440 = vst [vmem:[%s788_s5 + $0x60] sm:$0xff] %v408_v57  ;;  %v411_v31 = vadd.f32 %v379_v60, %v315_v54  ;;  %v351_v34 = vld [vmem:[%s744_s18 + $0x98] sm:$0xff]  ;;  %v320_v0 = vld [vmem:[%s739_s12 + $0xa0] sm:$0xff] }
  0x20   : > { %v382_v33 = vmul.f32 %v350_v26, %v286_v9  ;;  %v352_v4 = vld [vmem:[%s744_s18 + $0xa0] sm:$0xff]  ;;  %441 = vst [vmem:[%s788_s5 + $0x68] sm:$0xff] %v409_v17  ;;  %v412_v1 = vadd.f32 %v380_v19, %v316_v56  ;;  %v383_v35 = vmul.f32 %v351_v34, %v287_v13  ;;  %v321_v2 = vld [vmem:[%s739_s12 + $0xa8] sm:$0xff]  ;;  %v322_v40 = vld [vmem:[%s739_s12 + $0xb0] sm:$0xff] }
  0x21   : > { %442 = vst [vmem:[%s788_s5 + $0x70] sm:$0xff] %v410_v18  ;;  %v413_v8 = vadd.f32 %v381_v24, %v317_v62  ;;  %v384_v39 = vmul.f32 %v352_v4, %v288_v20  ;;  %v353_v9 = vld [vmem:[%s744_s18 + $0xa8] sm:$0xff]  ;;  %443 = vst [vmem:[%s788_s5 + $0x78] sm:$0xff] %v411_v31  ;;  %v354_v43 = vld [vmem:[%s744_s18 + $0xb0] sm:$0xff] }
  0x22   : > { %v414_v41 = vadd.f32 %v382_v33, %v318_v25  ;;  %v385_v42 = vmul.f32 %v353_v9, %v289_v21  ;;  %v323_v3 = vld [vmem:[%s739_s12 + $0xb8] sm:$0xff]  ;;  %444 = vst [vmem:[%s788_s5 + $0x80] sm:$0xff] %v412_v1  ;;  %v415_v5 = vadd.f32 %v383_v35, %v319_v27  ;;  %v386_v46 = vmul.f32 %v354_v43, %v290_v28  ;;  %v324_v6 = vld [vmem:[%s739_s12 + $0xc0] sm:$0xff]  ;;  %v325_v48 = vld [vmem:[%s739_s12 + $0xc8] sm:$0xff] }
  0x23   : > { %v355_v13 = vld [vmem:[%s744_s18 + $0xb8] sm:$0xff]  ;;  %445 = vst [vmem:[%s788_s5 + $0x88] sm:$0xff] %v413_v8  ;;  %v416_v20 = vadd.f32 %v384_v39, %v320_v0  ;;  %v356_v21 = vld [vmem:[%s744_s18 + $0xc0] sm:$0xff]  ;;  %v357_v51 = vld [vmem:[%s744_s18 + $0xc8] sm:$0xff] }
  0x24   : > { %v387_v47 = vmul.f32 %v355_v13, %v291_v29  ;;  %446 = vst [vmem:[%s788_s5 + $0x90] sm:$0xff] %v414_v41  ;;  %v417_v49 = vadd.f32 %v385_v42, %v321_v2  ;;  %v388_v50 = vmul.f32 %v356_v21, %v292_v30  ;;  %v326_v7 = vld [vmem:[%s739_s12 + $0xd0] sm:$0xff]  ;;  %447 = vst [vmem:[%s788_s5 + $0x98] sm:$0xff] %v415_v5  ;;  %v327_v11 = vld [vmem:[%s739_s12 + $0xd8] sm:$0xff] }
  0x25   : > { %v358_v28 = vld [vmem:[%s744_s18 + $0xd0] sm:$0xff]  ;;  %448 = vst [vmem:[%s788_s5 + $0xa0] sm:$0xff] %v416_v20  ;;  %v418_v10 = vadd.f32 %v386_v46, %v322_v40  ;;  %v389_v52 = vmul.f32 %v357_v51, %v293_v36  ;;  %v359_v30 = vld [vmem:[%s744_s18 + $0xd8] sm:$0xff]  ;;  %v328_v54 = vld [vmem:[%s739_s12 + $0xe0] sm:$0xff] }
  0x26   : > { %v419_v29 = vadd.f32 %v387_v47, %v323_v3  ;;  %v390_v53 = vmul.f32 %v358_v28, %v294_v37  ;;  %449 = vst [vmem:[%s788_s5 + $0xa8] sm:$0xff] %v417_v49  ;;  %v420_v55 = vadd.f32 %v388_v50, %v324_v6  ;;  %v391_v56 = vmul.f32 %v359_v30, %v295_v44  ;;  %v360_v57 = vld [vmem:[%s744_s18 + $0xe0] sm:$0xff]  ;;  %v329_v12 = vld [vmem:[%s739_s12 + $0xe8] sm:$0xff]  ;;  %v330_v44 = vld [vmem:[%s739_s12 + $0xf0] sm:$0xff] }
  0x27   : > { %v361_v36 = vld [vmem:[%s744_s18 + $0xe8] sm:$0xff]  ;;  %450 = vst [vmem:[%s788_s5 + $0xb0] sm:$0xff] %v418_v10  ;;  %v421_v14 = vadd.f32 %v389_v52, %v325_v48  ;;  %v392_v60 = vmul.f32 %v360_v57, %v296_v45  ;;  %v362_v61 = vld [vmem:[%s744_s18 + $0xf0] sm:$0xff]  ;;  %v331_v17 = vld [vmem:[%s739_s12 + $0xf8] sm:$0xff] }
  0x28   : > { %451 = vst [vmem:[%s788_s5 + $0xb8] sm:$0xff] %v419_v29  ;;  %v422_v37 = vadd.f32 %v390_v53, %v326_v7  ;;  %v393_v15 = vmul.f32 %v361_v36, %v297_v58  ;;  %452 = vst [vmem:[%s788_s5 + $0xc0] sm:$0xff] %v420_v55  ;;  %v423_v62 = vadd.f32 %v391_v56, %v327_v11  ;;  %v363_v18 = vld [vmem:[%s744_s18 + $0xf8] sm:$0xff] }
  0x29   : > { %v394_v63 = vmul.f32 %v362_v61, %v298_v59  ;;  %453 = vst [vmem:[%s788_s5 + $0xc8] sm:$0xff] %v421_v14  ;;  %v424_v16 = vadd.f32 %v392_v60, %v328_v54  ;;  %v395_v22 = vmul.f32 %v363_v18, %v299_v32 }
  0x2a   : > { %454 = vst [vmem:[%s788_s5 + $0xd0] sm:$0xff] %v422_v37  ;;  %v425_v45 = vadd.f32 %v393_v15, %v329_v12  ;;  %455 = vst [vmem:[%s788_s5 + $0xd8] sm:$0xff] %v423_v62 }
  0x2b   : > { %v426_v58 = vadd.f32 %v394_v63, %v330_v44  ;;  %456 = vst [vmem:[%s788_s5 + $0xe0] sm:$0xff] %v424_v16  ;;  %v427_v19 = vadd.f32 %v395_v22, %v331_v17 }
  0x2c   : > { %457 = vst [vmem:[%s788_s5 + $0xe8] sm:$0xff] %v425_v45 }
  0x2d   : > { %458 = vst [vmem:[%s788_s5 + $0xf0] sm:$0xff] %v426_v58  ;;  %459 = vst [vmem:[%s788_s5 + $0xf8] sm:$0xff] %v427_v19 }
  0x2e PF: > { %s13_s14 = sadd.s32 1, %s643_s14   ;;  %s967_s12 = smov %s639_s13 }
  0x2f   : > { %p10_p5 = scmp.ge.s32.totalorder %s13_s14, 4   ;;  %s968_s13 = smov %s970_s15 }
  0x31   :  { %12 = sbr.rel (!%p10_p5) target bundleno = 2 (0x2), region = 68 }

</bundles_post_ra>
